<compile_context>
chip_gen: v5e
topology: v5e:2x2
jax: 0.10.0
libtpu: 0.0.40
codegen_flags: <defaults>
</compile_context>

<pallas_src>
import functools
import math
import warnings

import jax
import jax.numpy as jnp
from jax.experimental import pallas as pl
from jax.experimental.pallas import tpu as pltpu

EPS = 1e-5  # torch F.layer_norm default

# Per-generation tiling / VMEM policy.
_CHIP_PARAMS = {
    # target_block_bytes: per-tile size aimed at the HBM roofline knee
    # min_steps: minimum grid steps to force when enough rows exist
    #            (v7x: 2 TensorCores x 2 pipelined blocks each)
    # vmem_cap: upper bound on vmem_limit_bytes (kept under physical VMEM)
    "v5e": dict(target_block_bytes=2 << 20, min_steps=1, vmem_cap=48 << 20),
    "v6e": dict(target_block_bytes=4 << 20, min_steps=1, vmem_cap=64 << 20),
    "v7x": dict(target_block_bytes=4 << 20, min_steps=4, vmem_cap=40 << 20),
}


def _detect_chip():
    try:
        kind = jax.devices()[0].device_kind.lower()
    except Exception:  # no device info — fall back to conservative defaults
        return "v6e"
    if "v7" in kind:
        return "v7x"
    if "v6" in kind:
        return "v6e"
    if "v5" in kind:
        return "v5e"
    return "v6e"


def _layer_norm_kernel(x_ref, gamma_ref, beta_ref, o_ref):
    # x_ref: (tile_rows, dim) in VMEM. Two-pass, numerically stable f32 stats.
    x = x_ref[...].astype(jnp.float32)
    mean = jnp.mean(x, axis=-1, keepdims=True)
    centered = x - mean
    var = jnp.mean(centered * centered, axis=-1, keepdims=True)  # population var
    inv = jax.lax.rsqrt(var + EPS)
    gamma = gamma_ref[...].astype(jnp.float32)  # (1, dim), stays VMEM-resident
    beta = beta_ref[...].astype(jnp.float32)    # (1, dim), stays VMEM-resident
    o_ref[...] = (centered * inv * gamma + beta).astype(o_ref.dtype)


def _round_up(n, m):
    return ((n + m - 1) // m) * m


def _choose_tile_rows(rows, dim, itemsize, chip):
    """Row tile: ~target-sized block, multiple of sublane packing, chip-aware split."""
    p = _CHIP_PARAMS[chip]
    # sublane packing: f32 -> 8 rows/vreg, bf16 -> 16, int8/fp8 -> 32
    row_mult = 8 * max(1, 4 // itemsize)
    rows_up = _round_up(rows, row_mult)
    # biggest tile that keeps each block near the target size
    t = (p["target_block_bytes"] // max(1, dim * itemsize)) // row_mult * row_mult
    t = max(row_mult, t)
    t = min(t, rows_up)
    # v7x only: ensure >= min_steps grid steps (>= 2 pipelined blocks per core)
    # when there is enough work; on single-TC v5e/v6e we never force a split.
    min_steps = p["min_steps"]
    if min_steps > 1 and rows_up >= min_steps * row_mult:
        cap = max(row_mult, (rows_up // min_steps) // row_mult * row_mult)
        t = min(t, cap)
    return t


@functools.partial(jax.jit, static_argnames=("tile_rows",))
def layer_norm(x, gamma, beta, *, tile_rows=None):
    """LayerNorm over the last axis of x. x: (..., dim). dim should be % 128 == 0."""
    orig_shape = x.shape
    dim = orig_shape[-1]
    rows = max(1, math.prod(orig_shape[:-1]))
    x2d = x.reshape(rows, dim)
    itemsize = jnp.dtype(x.dtype).itemsize

    if dim % 128 != 0:
        # Non-lane-dense last dim -> masked partial stores on the output; the
        # kernel is still correct but pad the feature dim upstream for speed.
        warnings.warn(
            f"layer_norm: dim={dim} is not a multiple of 128; output stores will "
            "be masked (slow). Pad the feature dim upstream if possible.")

    chip = _detect_chip()
    if tile_rows is None:
        tile_rows = _choose_tile_rows(rows, dim, itemsize, chip)

    grid = (pl.cdiv(rows, tile_rows),)  # ragged last block handled by Pallas

    gamma2d = gamma.reshape(1, dim)
    beta2d = beta.reshape(1, dim)

    # VMEM budget: double-buffered input + output tiles, plus the f32
    # intermediates (x_f32, centered, centered^2) Mosaic may materialize,
    # plus params and headroom. Capped per-chip (v7x physical VMEM is 64 MiB).
    buffered3 = chip == "v7x"
    tile_bytes = tile_rows * dim * itemsize
    f32_tile_bytes = tile_rows * dim * 4
    n_in_bufs = 3 if buffered3 else 2
    vmem_needed = (
        (n_in_bufs + 2) * tile_bytes      # pipelined x buffers + 2 output buffers
        + 3 * f32_tile_bytes              # f32 temporaries inside the kernel
        + 4 * dim * 4                     # gamma/beta (f32 copies included)
        + (4 << 20)                       # headroom
    )
    vmem_limit = int(min(_CHIP_PARAMS[chip]["vmem_cap"],
                         max(32 << 20, vmem_needed)))

    # Deeper input pipelining only where HBM is fast enough to expose DMA
    # issue latency (v7x).
    x_spec_kwargs = {"pipeline_mode": pl.Buffered(3)} if buffered3 else {}
    x_spec = pl.BlockSpec((tile_rows, dim), lambda i: (i, 0), **x_spec_kwargs)

    cost = pl.CostEstimate(
        flops=int(8 * rows * dim),
        transcendentals=int(rows),                              # one rsqrt per row
        bytes_accessed=int(2 * rows * dim * itemsize + 2 * dim * 4),
    )

    out = pl.pallas_call(
        _layer_norm_kernel,
        out_shape=jax.ShapeDtypeStruct((rows, dim), x.dtype),
        grid_spec=pltpu.PrefetchScalarGridSpec(
            num_scalar_prefetch=0,
            grid=grid,
            in_specs=[
                x_spec,
                pl.BlockSpec((1, dim), lambda i: (0, 0)),  # gamma: resident
                pl.BlockSpec((1, dim), lambda i: (0, 0)),  # beta: resident
            ],
            out_specs=pl.BlockSpec((tile_rows, dim), lambda i: (i, 0)),
        ),
        compiler_params=pltpu.CompilerParams(
            dimension_semantics=("parallel",),
            vmem_limit_bytes=vmem_limit,
        ),
        cost_estimate=cost,
    )(x2d, gamma2d, beta2d)

    return out.reshape(orig_shape)


if __name__ == "__main__":
    key = jax.random.PRNGKey(0)
    # lane-dense demo shape (dim % 128 == 0)
    batch, seq, dim = 2, 8, 128

    x = jax.random.normal(key, (batch, seq, dim), dtype=jnp.float32)

    # deterministic parameter init matching nn.Module __init__:
    gamma = jnp.ones((dim,), dtype=jnp.float32)   # nn.Parameter(torch.ones(dim))
    beta = jnp.zeros((dim,), dtype=jnp.float32)   # registered buffer torch.zeros(dim)

    out = layer_norm(x, gamma, beta)
    jax.block_until_ready(out)

    # sanity-check against plain-JAX reference
    mean = jnp.mean(x, axis=-1, keepdims=True)
    var = jnp.mean((x - mean) ** 2, axis=-1, keepdims=True)
    ref = (x - mean) / jnp.sqrt(var + EPS) * gamma + beta
    assert jnp.allclose(out, ref, atol=1e-5, rtol=1e-5), "mismatch vs reference"

    print("KERNEL_OK")
</pallas_src>

<mosaic_0001>
module attributes {stable_mosaic.version = 11 : i64} {
  func.func @_layer_norm_kernel(%arg0: i32, %arg1: memref<16x128xf32, #tpu.memory_space<vmem>>, %arg2: memref<1x128xf32, #tpu.memory_space<vmem>>, %arg3: memref<1x128xf32, #tpu.memory_space<vmem>>, %arg4: memref<16x128xf32, #tpu.memory_space<vmem>>) attributes {dimension_semantics = [#tpu.dimension_semantics<parallel>], iteration_bounds = array<i64: 1>, scalar_prefetch = 0 : i64, scratch_operands = 0 : i64, tpu.core_type = #tpu.core_type<tc>, window_params = [{transform_indices = @transform_0, window_bounds = array<i64: 16, 128>}, {pipeline_mode = #tpu.pipeline_mode<synchronous>, transform_indices = @transform_1, window_bounds = array<i64: 1, 128>}, {pipeline_mode = #tpu.pipeline_mode<synchronous>, transform_indices = @transform_2, window_bounds = array<i64: 1, 128>}, {transform_indices = @transform_3, window_bounds = array<i64: 16, 128>}]} {
    %c0 = arith.constant 0 : index
    %c0_0 = arith.constant 0 : index
    %0 = vector.load %arg1[%c0, %c0_0] : memref<16x128xf32, #tpu.memory_space<vmem>>, vector<16x128xf32>
    %cst = arith.constant dense<0.000000e+00> : vector<16xf32>
    %1 = vector.multi_reduction <add>, %0, %cst [1] : vector<16x128xf32> to vector<16xf32>
    %2 = vector.shape_cast %1 : vector<16xf32> to vector<16x1xf32>
    %cst_1 = arith.constant 1.280000e+02 : f32
    %3 = vector.broadcast %cst_1 : f32 to vector<16x1xf32>
    %4 = arith.divf %2, %3 : vector<16x1xf32>
    %5 = vector.broadcast %4 : vector<16x1xf32> to vector<16x128xf32>
    %6 = arith.subf %0, %5 : vector<16x128xf32>
    %7 = arith.mulf %6, %6 : vector<16x128xf32>
    %cst_2 = arith.constant dense<0.000000e+00> : vector<16xf32>
    %8 = vector.multi_reduction <add>, %7, %cst_2 [1] : vector<16x128xf32> to vector<16xf32>
    %9 = vector.shape_cast %8 : vector<16xf32> to vector<16x1xf32>
    %cst_3 = arith.constant 1.280000e+02 : f32
    %10 = vector.broadcast %cst_3 : f32 to vector<16x1xf32>
    %11 = arith.divf %9, %10 : vector<16x1xf32>
    %cst_4 = arith.constant 9.99999974E-6 : f32
    %12 = vector.broadcast %cst_4 : f32 to vector<16x1xf32>
    %13 = arith.addf %11, %12 : vector<16x1xf32>
    %14 = math.rsqrt %13 : vector<16x1xf32>
    %c0_5 = arith.constant 0 : index
    %c0_6 = arith.constant 0 : index
    %15 = vector.load %arg2[%c0_5, %c0_6] : memref<1x128xf32, #tpu.memory_space<vmem>>, vector<1x128xf32>
    %c0_7 = arith.constant 0 : index
    %c0_8 = arith.constant 0 : index
    %16 = vector.load %arg3[%c0_7, %c0_8] : memref<1x128xf32, #tpu.memory_space<vmem>>, vector<1x128xf32>
    %17 = vector.broadcast %14 : vector<16x1xf32> to vector<16x128xf32>
    %18 = arith.mulf %6, %17 : vector<16x128xf32>
    %19 = vector.broadcast %15 : vector<1x128xf32> to vector<16x128xf32>
    %20 = arith.mulf %18, %19 : vector<16x128xf32>
    %21 = vector.broadcast %16 : vector<1x128xf32> to vector<16x128xf32>
    %22 = arith.addf %20, %21 : vector<16x128xf32>
    %c0_9 = arith.constant 0 : index
    %c0_10 = arith.constant 0 : index
    %23 = vector.load %arg4[%c0_9, %c0_10] : memref<16x128xf32, #tpu.memory_space<vmem>>, vector<16x128xf32>
    tpu.vector_store %arg4[%c0_9, %c0_10], %22 {strides = array<i32>} : memref<16x128xf32, #tpu.memory_space<vmem>>, vector<16x128xf32>,
    return
  }
  func.func @transform_0(%arg0: i32) -> (i32, i32) {
    %c0_i32 = arith.constant 0 : i32
    %c0_i32_0 = arith.constant 0 : i32
    return %arg0, %c0_i32 : i32, i32
  }
  func.func @transform_1(%arg0: i32) -> (i32, i32) {
    %c0_i32 = arith.constant 0 : i32
    %c0_i32_0 = arith.constant 0 : i32
    %c0_i32_1 = arith.constant 0 : i32
    return %c0_i32, %c0_i32_0 : i32, i32
  }
  func.func @transform_2(%arg0: i32) -> (i32, i32) {
    %c0_i32 = arith.constant 0 : i32
    %c0_i32_0 = arith.constant 0 : i32
    %c0_i32_1 = arith.constant 0 : i32
    return %c0_i32, %c0_i32_0 : i32, i32
  }
  func.func @transform_3(%arg0: i32) -> (i32, i32) {
    %c0_i32 = arith.constant 0 : i32
    %c0_i32_0 = arith.constant 0 : i32
    return %arg0, %c0_i32 : i32, i32
  }
}

</mosaic_0001>

<bundles_post_ra>
// kernel: layer_norm.1
= control target key start
LH: loop header
LB: loop body
LE: loop exit
PB: predicated region body
PF: predicated region fallthrough
CT: control target
= control target key end

     0   :  { %8 = vsyncpa [#allocation3], 0  ;;  %s221_s0 = inlined_call_operand.hbm [shape: f32[16,128], index: 0, kind: input, shape index: {}]   ;;  %s222_s1 = inlined_call_operand.vmem [shape: f32[1,128], index: 1, kind: input, shape index: {}]   ;;  %s223_s2 = inlined_call_operand.vmem [shape: f32[1,128], index: 2, kind: input, shape index: {}]   ;;  %s224_s3 = inlined_call_operand.hbm [shape: f32[16,128], index: 3, kind: output, shape index: {}]  }
   0x1   :  { %9 = vsyncpa [#allocation4], 0  ;;  %s14_s14 = sshll.u32 %s221_s0, 4  ;;  %s178_s15 = smov [#allocation2]   ;;  %s15_s14 = int_to_ptr.hbm [resolvable:$true] %s14_s14 }
   0x2   :  { %s16_s16 = sshll.u32 %s178_s15, 4  ;;  %s179_s17 = smov 128   ;;  %s17_s16 = int_to_ptr.vmem [resolvable:$true] %s16_s16 }
   0x3   :  { %s180_s18 = smov 8  }
   0x4   :  { %22 = dma.hbm_to_vmem [thread:$0]  %s15_s14, 256, %s17_s16, [#allocation3], %s179_s17, %s179_s17, %s180_s18  }
   0x5   :  { %174 = dma.done.wait [#allocation3], 256  }
   0x6   :  { %175 = vsyncadd [#allocation3], 4294967040  ;;  %v31_v0 = vld [vmem:[#allocation2] sm:$0xff]  ;;  %v32_v1 = vld [vmem:[#allocation2 + $0x8] sm:$0xff]  ;;  %v181_v2 = vmov 128.0   ;;  %s182_s22 = smov [#allocation5]  }
   0x7   :  { %33 = vadd.xlane.f32.xlu0 %v31_v0  ;;  %120 = vrcp.f32 %v181_v2  ;;  %v118_v31 = vld [vmem:[%s222_s1] ss:$0 sm:$0xff]  ;;  %s98_s1 = sshll.u32 %s182_s22, 4  ;;  %s100_s25 = sshll.u32 %s224_s3, 4  ;;  %s99_s1 = int_to_ptr.vmem [resolvable:$true] %s98_s1  ;;  %s101_s25 = int_to_ptr.hbm [resolvable:$true] %s100_s25 }
   0x8   :  { %v119_v35 = vld [vmem:[%s223_s2] ss:$0 sm:$0xff] }
   0xd   :  { %v121_v3 = vpop.eup %120 }
   0xe   :  { %v38_v4 = vmul.f32 128.0, %v121_v3  ;;  %vm42_vm0 = vweird.f32 %v121_v3 }
   0xf   :  { %35 = vadd.xlane.f32.xlu0 %v32_v1 }
  0x10   :  { %v39_v5 = vsub.f32 1.0, %v38_v4 }
  0x12   :  { %v40_v6 = vmul.f32 %v121_v3, %v39_v5 }
  0x14   :  { %v41_v7 = vadd.f32 %v121_v3, %v40_v6 }
  0x16   :  { %v43_v8 = vsel %vm42_vm0, %v121_v3, %v41_v7 }
  0x7a   :  { %v34_v9 = vpop.xlane.xlu0 %33 }
  0x7b   :  { %v44_v10 = vmul.f32 %v43_v8, %v34_v9 }
  0x7d   :  { %v46_v11 = vsub.f32 %v31_v0, %v44_v10 }
  0x7f   :  { %v48_v12 = vmul.f32 %v46_v11, %v46_v11 }
  0x81   :  { %50 = vadd.xlane.f32.xlu1 %v48_v12 }
  0x82   :  { %v36_v13 = vpop.xlane.xlu0 %35 }
  0x83   :  { %v45_v14 = vmul.f32 %v43_v8, %v36_v13 }
  0x85   :  { %v47_v15 = vsub.f32 %v32_v1, %v45_v14 }
  0x87   :  { %v49_v16 = vmul.f32 %v47_v15, %v47_v15 }
  0x89   :  { %52 = vadd.xlane.f32.xlu1 %v49_v16 }
  0xf4   :  { %v51_v17 = vpop.xlane.xlu1 %50 }
  0xf5   :  { %v54_v18 = vmul.f32 %v51_v17, %v43_v8 }
  0xf7   :  { %v56_v19 = vadd.f32 1e-05, %v54_v18 }
  0xf9   :  { %122 = vrsqrt.f32 %v56_v19  ;;  %vm64_vm2 = vweird.f32 %v56_v19 }
  0xfc   :  { %v53_v20 = vpop.xlane.xlu1 %52 }
  0xfd   :  { %v55_v21 = vmul.f32 %v53_v20, %v43_v8 }
  0xff   :  { %v123_v22 = vpop.eup %122  ;;  %v57_v23 = vadd.f32 1e-05, %v55_v21 }
 0x100   :  { %v59_v24 = vmul.f32 %v123_v22, %v56_v19  ;;  %vm65_vm1 = vweird.f32 %v123_v22 }
 0x101   :  { %124 = vrsqrt.f32 %v57_v23  ;;  %vm66_vm3 = vmor %vm64_vm2, %vm65_vm1  ;;  %vm74_vm5 = vweird.f32 %v57_v23 }
 0x102   :  { %v60_v25 = vmul.f32 %v123_v22, %v59_v24 }
 0x104   :  { %v61_v26 = vmul.f32 0.5, %v60_v25 }
 0x106   :  { %v62_v27 = vsub.f32 1.5, %v61_v26 }
 0x107   :  { %v125_v28 = vpop.eup %124 }
 0x108   :  { %v63_v29 = vmul.f32 %v123_v22, %v62_v27  ;;  %v69_v30 = vmul.f32 %v125_v28, %v57_v23  ;;  %vm75_vm4 = vweird.f32 %v125_v28 }
 0x109   :  { %vm76_vm6 = vmor %vm74_vm5, %vm75_vm4 }
 0x10a   :  { %v67_v32 = vsel %vm66_vm3, %v123_v22, %v63_v29  ;;  %v70_v33 = vmul.f32 %v125_v28, %v69_v30 }
 0x10b   :  { %v80_v34 = vmul.f32 %v67_v32, %v46_v11 }
 0x10c   :  { %v71_v36 = vmul.f32 0.5, %v70_v33 }
 0x10d   :  { %v85_v37 = vmul.f32 %v118_v31, %v80_v34 }
 0x10e   :  { %v72_v38 = vsub.f32 1.5, %v71_v36 }
 0x10f   :  { %v90_v39 = vadd.f32 %v119_v35, %v85_v37 }
 0x110   :  { %v73_v40 = vmul.f32 %v125_v28, %v72_v38 }
 0x111   :  { %92 = vst [vmem:[#allocation5] sm:$0xff] %v90_v39 }
 0x112   :  { %v77_v41 = vsel %vm76_vm6, %v125_v28, %v73_v40 }
 0x113   :  { %v81_v42 = vmul.f32 %v77_v41, %v47_v15 }
 0x115   :  { %v86_v43 = vmul.f32 %v118_v31, %v81_v42 }
 0x117   :  { %v91_v44 = vadd.f32 %v119_v35, %v86_v43 }
 0x119   :  { %93 = vst [vmem:[#allocation5 + $0x8] sm:$0xff] %v91_v44 }
 0x11a   :  { %106 = dma.vmem_to_hbm [thread:$0]  %s99_s1, 256, %s101_s25, [#allocation4], %s179_s17, %s179_s17, %s180_s18  }
 0x11b   :  { %176 = dma.done.wait [#allocation4], 256  }
 0x11c   :  { %177 = vsyncadd [#allocation4], 4294967040 }
 0x11d   :  { %111 = vsyncpa [#allocation3], 1 }
 0x11e   :  { %112 = vsyncpa [#allocation4], 1 }

</bundles_post_ra>
